<compile_context>
chip_gen: v7x
topology: tpu7x:2x2x1
jax: 0.10.0
libtpu: 0.0.40
codegen_flags: <defaults>
</compile_context>

<pallas_src>
import functools

import jax
import jax.numpy as jnp
from jax.experimental import pallas as pl
from jax.experimental.pallas import tpu as pltpu

COEF = 0.97  # module's __init__ default
LANE = 128
_SUBLANE_MIN = {4: 8, 2: 16, 1: 32}  # itemsize -> sublane packing minimum


def preemphasis_ref(x: jnp.ndarray, coef: float = COEF) -> jnp.ndarray:
    """Pure-JAX reference reproducing F.pad(..., 'reflect') + F.conv1d([-coef, 1])."""
    x_pad = jnp.concatenate([x[:, 1:2], x], axis=1)
    return x_pad[:, 1:] - coef * x_pad[:, :-1]


def _preemphasis_kernel(x_ref, halo_ref, o_ref, *, coef):
    ti = pl.program_id(1)
    x = x_ref[...]                            # (TB, TT)
    # prev[:, t] = x[:, t-1] for t > 0 (XLU rotate, effectively free); the
    # wrap at t == 0 is fixed by the 1-column overwrite below.
    prev = pltpu.roll(x, shift=1, axis=1)
    o_ref[...] = x - coef * prev

    # Predecessor of this tile's first sample:
    #   ti == 0 : reflect pad of width 1 -> x[:, 1]
    #   ti  > 0 : last sample of the previous time tile = lane 127 of the
    #             128-lane halo block of x selected by halo_ref's index_map.
    bval = jnp.where(ti == 0, x[:, 1:2], halo_ref[:, 127:128])   # (TB, 1)
    o_ref[:, :1] = x[:, :1] - coef * bval


def preemphasis(x: jax.Array, coef: float = COEF, t_tile: int | None = None) -> jax.Array:
    assert x.ndim == 2, "The number of dimensions of input tensor must be 2!"
    B, T = x.shape
    assert T >= 2, "reflect padding of width 1 requires T >= 2"
    dtype = x.dtype
    itemsize = jnp.dtype(dtype).itemsize

    # Tiny problems: pallas_call launch/step overhead dominates and XLA fuses
    # the shift+subtract just as well. (Explicit t_tile forces the kernel.)
    if t_tile is None and B * T * itemsize <= 64 * 1024:
        return preemphasis_ref(x, coef)

    sublane = _SUBLANE_MIN.get(itemsize, 8)

    # ---- batch tiling: full dim if small (block == full dim is always legal),
    # else 64-row tiles; Pallas handles the partial final block. ----
    TB = B if B <= 64 else 64
    padded_TB = max(pl.cdiv(TB, sublane) * sublane, sublane)  # VMEM sublane padding

    # ---- time tiling: lane-dense, ~4 MiB per (sublane-padded) input tile ----
    if t_tile is not None:
        assert t_tile % LANE == 0 and t_tile >= LANE
        TT = t_tile
    else:
        target_bytes = 4 * 1024 * 1024
        tt_raw = max(LANE, (target_bytes // (itemsize * padded_TB)) // LANE * LANE)
        TT = min(tt_raw, pl.cdiv(T, LANE) * LANE)
    tt_blocks = TT // LANE

    grid = (pl.cdiv(B, TB), pl.cdiv(T, TT))

    # Scoped-VMEM budget: 2x double-buffered (TB, TT) tiles (in + out) plus
    # elementwise intermediates; keep well under v7x's 64 MiB physical VMEM.
    tile_bytes = padded_TB * TT * itemsize
    vmem_limit = int(min(max(8 * tile_bytes + (4 << 20), 32 << 20), 48 << 20))

    # Main (TB, TT) tile of x / out.
    tile_spec = pl.BlockSpec((TB, TT), lambda bi, ti: (bi, ti))
    # 128-lane halo block of x whose lane 127 holds x[:, ti*TT - 1] (the sample
    # preceding this time tile). For ti == 0 it is clamped to block 0 and the
    # value is unused (the kernel selects the reflect value instead).
    halo_spec = pl.BlockSpec(
        (TB, LANE), lambda bi, ti: (bi, jnp.maximum(ti * tt_blocks - 1, 0)))

    return pl.pallas_call(
        functools.partial(_preemphasis_kernel, coef=coef),
        out_shape=jax.ShapeDtypeStruct((B, T), dtype),
        grid_spec=pltpu.PrefetchScalarGridSpec(
            num_scalar_prefetch=0,
            grid=grid,
            in_specs=[tile_spec, halo_spec],
            out_specs=tile_spec,
        ),
        compiler_params=pltpu.CompilerParams(
            dimension_semantics=("parallel", "parallel"),
            vmem_limit_bytes=vmem_limit,
        ),
    )(x, x)


if __name__ == "__main__":
    key = jax.random.PRNGKey(0)
    k1, k2, k3 = jax.random.split(key, 3)

    # Case 1: the module's canonical tiny shape -> tiny-input fast path.
    x1 = jax.random.normal(k1, (2, 256), dtype=jnp.float32)
    o1 = preemphasis(x1)
    jax.block_until_ready(o1)
    assert o1.shape == (2, 256) and o1.dtype == jnp.float32
    assert jnp.allclose(o1, preemphasis_ref(x1), atol=1e-6, rtol=1e-6)

    # Case 2: ~1 s of 16 kHz audio, ragged T, forced multi-time-tile grid:
    # exercises the cross-tile halo predecessor + the partial final time block.
    x2 = jax.random.normal(k2, (2, 16320), dtype=jnp.float32)
    o2 = preemphasis(x2, t_tile=4096)
    jax.block_until_ready(o2)
    assert jnp.allclose(o2, preemphasis_ref(x2), atol=1e-6, rtol=1e-6)

    # Case 3: batch > 64 with ragged T, default tiling: exercises the partial
    # final batch block and a time block larger than T (single partial tile).
    x3 = jax.random.normal(k3, (70, 1000), dtype=jnp.float32)
    o3 = preemphasis(x3)
    jax.block_until_ready(o3)
    assert jnp.allclose(o3, preemphasis_ref(x3), atol=1e-6, rtol=1e-6)

    print("KERNEL_OK")
</pallas_src>

<mosaic_0001>
module attributes {stable_mosaic.version = 11 : i64} {
  func.func @_preemphasis_kernel(%arg0: i32, %arg1: i32, %arg2: memref<2x4096xf32, #tpu.memory_space<vmem>>, %arg3: memref<2x128xf32, #tpu.memory_space<vmem>>, %arg4: memref<2x4096xf32, #tpu.memory_space<vmem>>) attributes {dimension_semantics = [#tpu.dimension_semantics<parallel>, #tpu.dimension_semantics<parallel>], iteration_bounds = array<i64: 1, 4>, scalar_prefetch = 0 : i64, scratch_operands = 0 : i64, tpu.core_type = #tpu.core_type<tc>, window_params = [{transform_indices = @transform_0, window_bounds = array<i64: 2, 4096>}, {transform_indices = @transform_1, window_bounds = array<i64: 2, 128>}, {transform_indices = @transform_2, window_bounds = array<i64: 2, 4096>}]} {
    %c0 = arith.constant 0 : index
    %c0_0 = arith.constant 0 : index
    %0 = vector.load %arg2[%c0, %c0_0] : memref<2x4096xf32, #tpu.memory_space<vmem>>, vector<2x4096xf32>
    %c1_i32 = arith.constant 1 : i32
    %1 = tpu.dynamic_rotate %0 by %c1_i32 dim 1 : vector<2x4096xf32>, i32 -> vector<2x4096xf32>
    %cst = arith.constant 9.700000e-01 : f32
    %2 = vector.broadcast %cst : f32 to vector<2x4096xf32>
    %3 = arith.mulf %2, %1 : vector<2x4096xf32>
    %4 = arith.subf %0, %3 : vector<2x4096xf32>
    %c0_1 = arith.constant 0 : index
    %c0_2 = arith.constant 0 : index
    %5 = vector.load %arg4[%c0_1, %c0_2] : memref<2x4096xf32, #tpu.memory_space<vmem>>, vector<2x4096xf32>
    tpu.vector_store %arg4[%c0_1, %c0_2], %4 {strides = array<i32>} : memref<2x4096xf32, #tpu.memory_space<vmem>>, vector<2x4096xf32>,
    %c0_i32 = arith.constant 0 : i32
    %6 = arith.cmpi eq, %arg1, %c0_i32 : i32
    %7 = vector.extract_strided_slice %0 {offsets = [0, 1], sizes = [2, 1], strides = [1, 1]} : vector<2x4096xf32> to vector<2x1xf32>
    %c0_3 = arith.constant 0 : index
    %c127 = arith.constant 127 : index
    %8 = vector.load %arg3[%c0_3, %c127] : memref<2x128xf32, #tpu.memory_space<vmem>>, vector<2x1xf32>
    %9 = arith.select %6, %7, %8 : vector<2x1xf32>
    %10 = vector.extract_strided_slice %0 {offsets = [0, 0], sizes = [2, 1], strides = [1, 1]} : vector<2x4096xf32> to vector<2x1xf32>
    %cst_4 = arith.constant 9.700000e-01 : f32
    %11 = vector.broadcast %cst_4 : f32 to vector<2x1xf32>
    %12 = arith.mulf %11, %9 : vector<2x1xf32>
    %13 = arith.subf %10, %12 : vector<2x1xf32>
    %c0_5 = arith.constant 0 : index
    %c0_6 = arith.constant 0 : index
    %14 = vector.load %arg4[%c0_5, %c0_6] : memref<2x4096xf32, #tpu.memory_space<vmem>>, vector<2x1xf32>
    tpu.vector_store %arg4[%c0_5, %c0_6], %13 {strides = array<i32>} : memref<2x4096xf32, #tpu.memory_space<vmem>>, vector<2x1xf32>,
    return
  }
  func.func @transform_0(%arg0: i32, %arg1: i32) -> (i32, i32) {
    %c0_i32 = arith.constant 0 : i32
    return %arg0, %arg1 : i32, i32
  }
  func.func @transform_1(%arg0: i32, %arg1: i32) -> (i32, i32) {
    %c32_i32 = arith.constant 32 : i32
    %0 = arith.muli %arg1, %c32_i32 : i32
    %c1_i32 = arith.constant 1 : i32
    %1 = arith.subi %0, %c1_i32 : i32
    %c0_i32 = arith.constant 0 : i32
    %2 = arith.maxsi %1, %c0_i32 : i32
    %c0_i32_0 = arith.constant 0 : i32
    return %arg0, %2 : i32, i32
  }
  func.func @transform_2(%arg0: i32, %arg1: i32) -> (i32, i32) {
    %c0_i32 = arith.constant 0 : i32
    return %arg0, %arg1 : i32, i32
  }
}

</mosaic_0001>

<bundles_post_ra>
// kernel: tpu_custom_call.1
= control target key start
LH: loop header
LB: loop body
LE: loop exit
PB: predicated region body
PF: predicated region fallthrough
CT: control target
= control target key end

     0   :  { %s1713_s0 = inlined_call_operand.hbm [shape: f32[2,16320], index: 0, kind: input, shape index: {}]   ;;  %s1714_s1 = inlined_call_operand.hbm [shape: f32[2,16320], index: 1, kind: input, shape index: {}]   ;;  %s1715_s2 = inlined_call_operand.hbm [shape: f32[2,16320], index: 2, kind: output, shape index: {}]  }
   0x1   :  { %1721 = sst [smem:[#allocation11_spill]] %s1713_s0 }
   0x2   :  { %7 = vsyncpa [#allocation3], 0 }
   0x3   :  { %9 = vsyncpa [#allocation3 + $0x1], 0 }
   0x4   :  { %10 = vsyncpa [#allocation6], 0 }
   0x5   :  { %12 = vsyncpa [#allocation6 + $0x1], 0 }
   0x6   :  { %13 = vsyncpa [#allocation4], 0 }
   0x7   :  { %15 = vsyncpa [#allocation4 + $0x1], 0  ;;  %s1219_s9 = smov 0   ;;  %s1221_s10 = smov 0  }
   0x8   :  { %s1223_s11 = smov 0   ;;  %s1225_s12 = smov 0  }
   0x9   :  { %s1227_s13 = smov 0   ;;  %s1229_s14 = smov 0  }
   0xa   :  { %s1231_s15 = smov 0   ;;  %s1233_s16 = smov 0  }
   0xb   :  { %s1235_s17 = smov 0  }
   0xc LB: > { %s895_s18 = sadd.s32 4294967295, %s1195_s17   ;;  %s896_s19 = sadd.s32 4294967294, %s1195_s17   ;;  %s1195_s17 = sphi %s1235_s17, %s21_s17   ;;  %s1191_s16 = sphi %s1233_s16, %s1748_s16   ;;  %s1187_s15 = sphi %s1231_s15, %s1747_s15   ;;  %s1183_s14 = sphi %s1229_s14, %s1746_s14   ;;  %s1179_s13 = sphi %s1227_s13, %s1745_s13   ;;  %s1175_s12 = sphi %s1225_s12, %s1744_s12   ;;  %s1171_s11 = sphi %s1223_s11, %s1743_s11   ;;  %s1167_s10 = sphi %s1221_s10, %s1742_s10   ;;  %s1163_s9 = sphi %s1219_s9, %s1741_s9  }
   0xd   : > { %s30_s20 = sadd.s32 1, %s1191_s16  ;;  %s42_s21 = sadd.s32 1, %s1183_s14 }
   0xe   : > { %p31_p0 = scmp.ge.s32.totalorder %s30_s20, 4  ;;  %p49_p1 = scmp.ne.s32.totalorder %s1183_s14, %s1179_s13 }
   0xf   : > { %p1717_p2 = scmp.eq.s32.totalorder %s1195_s17, 0  ;;  %p55_p3 = scmp.ne.s32.totalorder %s1179_s13, %s1175_s12 }
  0x10   : > { %s1750_s20 = smov (%p31_p0, %s30_s20), 0  ;;  %p1281_p5 = scmp.eq.s32.totalorder %s895_s18, 0 }
  0x11   : > { %p1277_p4 = por %p1717_p2, %p49_p1  ;;  %s38_s24 = ssub.s32 %s1191_s16, %s1750_s20 }
  0x12   : > { %p117_p6 = scmp.eq.s32.totalorder %s895_s18, 3  ;;  %p40_p7 = scmp.eq.s32.totalorder %s38_s24, 0 }
  0x13   : > { %p1289_p8 = por %p1281_p5, %p55_p3  ;;  %p123_p10 = scmp.eq.s32.totalorder %s896_s19, 3 }
  0x14   : > { %p1293_p9 = por %p117_p6, %p49_p1  ;;  %p1716_p12 = scmp.lt.s32.totalorder %s1195_s17, 4 }
  0x15   : > { %s1724_s25 = scalar_select %p1289_p8, 1, 0 }
  0x16   : > { %s1725_s26 = scalar_select %p1293_p9, 1, 0 }
  0x17   : > { %s1298_s27 = scalar_select %p40_p7, %s1183_s14, %s42_s21  }
  0x18   : > { %p1300_p11 = por %p123_p10, %p55_p3  ;;  %s143_s29 = sand.u32 1, %s1183_s14  }
  0x19   : > { %s903_s30 = sshll.u32 %s143_s29, 6  ;;  %s920_s3 = sshll.u32 %s1191_s16, 10 }
  0x1a   : > { %s1726_s28 = scalar_select %p1300_p11, 1, 0 }
  0x1b   : > { %s1727_s0 = sld [smem:[#allocation11_spill]]  ;;  %s147_s7 = scalar_lea.vmem [#allocation2], %s903_s30 }
  0x1c   : > { %s157_s8 = sshll.u32 %s147_s7, 4  ;;  %p1318_p13 = pnand %p1716_p12, %p1277_p4  ;;  %s1312_s8 = int_to_ptr.vmem [resolvable:$true] %s157_s8 }
  0x1d   : > { %s144_s19 = scalar_lea.sflag [#allocation3], %s143_s29 }
  0x1e   : > { %p1027_p6 = pneg %p1318_p13 }
  0x21   : > { %s1310_s6 = scalar_lea.hbm %s1727_s0, %s920_s3  ;;  %s1030_s30 = scalar_lea.hbm %s1727_s0, 4096 }
  0x22   : > { %s1025_s21 = scalar_lea.hbm %s1310_s6, 1024  ;;  %p1031_p4 = scmp.lt.u32.totalorder %s1310_s6, %s1727_s0 }
  0x23   : > { %p1026_p3 = scmp.ne.s32.totalorder %s1310_s6, %s1025_s21  ;;  %p1032_p12 = scmp.lt.u32.totalorder %s1030_s30, %s1025_s21 }
  0x24   : > { %p1034_p0 = scmp.lt.u32.totalorder %s1025_s21, %s1310_s6 }
  0x25   : > { %p1028_p7 = pnand %p1027_p6, %p1026_p3  ;;  %p1033_p2 = por %p1032_p12, %p1031_p4 }
  0x27   : > { %p1029_p10 = pneg %p1028_p7  ;;  %p1035_p1 = por %p1034_p0, %p1033_p2 }
  0x29   : > { %p1036_p11 = pnand %p1035_p1, %p1029_p10 }
  0x2b   : > { %1039 = shalt.err (!%p1036_p11)
}
  0x2c   : > { %s1040_s29 = scalar_lea.vmem %s1312_s8, 1024  ;;  %s1197_s5 = smov [#allocation2]  }
  0x2d   : > { %p1041_p3 = scmp.ne.s32.totalorder %s1312_s8, %s1040_s29  ;;  %s1045_s7 = sshll.u32 %s1197_s5, 4  ;;  %s1046_s7 = int_to_ptr.vmem [resolvable:$false] %s1045_s7 }
  0x2e   : > { %s1047_s24 = scalar_lea.vmem %s1046_s7, 2048  ;;  %p1048_p8 = scmp.lt.s32.totalorder %s1312_s8, %s1046_s7 }
  0x2f   : > { %p1043_p7 = pnand %p1041_p3, %p1027_p6  ;;  %p1049_p12 = scmp.lt.s32.totalorder %s1047_s24, %s1040_s29 }
  0x31   : > { %p1044_p9 = pneg %p1043_p7  ;;  %p1050_p4 = por %p1049_p12, %p1048_p8 }
  0x33   : > { %p1051_p2 = pnand %p1050_p4, %p1044_p9 }
  0x35   : > { %1054 = shalt.err (!%p1051_p2)
}
  0x36   : > { %931 = dma.hbm_to_vmem [thread:$0]  (!%p1318_p13), %s1310_s6, 1024, %s1312_s8, %s144_s19  }
  0x37   : > { %p1729_p11 = scmp.lt.s32.totalorder %s1195_s17, 5  ;;  %p1730_p8 = scmp.ge.s32.totalorder %s1195_s17, 1 }
  0x38   : > { %s897_s18 = sshll.u32 %s1191_s16, 5  ;;  %s899_s22 = sshll.u32 %s1750_s20, 5 }
  0x39   : > { %p1353_p9 = pnand %p1730_p8, %p1729_p11  ;;  %s898_s30 = sadd.s32 4294967295, %s897_s18 }
  0x3a   : > { %s900_s3 = sadd.s32 4294967295, %s899_s22  ;;  %p67_p0 = scmp.gt.s32.totalorder %s898_s30, 0 }
  0x3b   : > { %p71_p1 = scmp.gt.s32.totalorder %s900_s3, 0  ;;  %s78_s4 = sadd.s32 1, %s1171_s11 }
  0x3c   : > { %p85_p6 = scmp.ne.s32.totalorder %s1171_s11, %s1167_s10  ;;  %s1752_s30 = smov (!%p67_p0, %s898_s30), 0 }
  0x3d   : > { %s1754_s3 = smov (!%p71_p1, %s900_s3), 0  ;;  %p1732_p13 = scmp.eq.s32.totalorder %s1195_s17, 0 }
  0x3e   : > { %p91_p3 = scmp.ne.s32.totalorder %s1167_s10, %s1163_s9  ;;  %s74_s8 = ssub.s32 %s1752_s30, %s1754_s3 }
  0x3f   : > { %p1364_p10 = por %p85_p6, %p1732_p13  ;;  %s164_s19 = sand.u32 1, %s1171_s11  }
  0x40   : > { %p76_p7 = scmp.eq.s32.totalorder %s74_s8, 0  ;;  %p1373_p12 = por %p91_p3, %p1281_p5 }
  0x41   : > { %s906_s5 = sshll.u32 %s164_s19, 1  ;;  %s909_s24 = sshll.u32 %s1752_s30, 5 }
  0x42   : > { %s1734_s29 = scalar_select %p1373_p12, 1, 0 }
  0x43   : > { %s1378_s7 = scalar_select %p76_p7, %s1171_s11, %s78_s4  }
  0x44   : > { %s1383_s0 = scalar_lea.hbm %s1714_s1, %s909_s24  ;;  %s168_s9 = scalar_lea.vmem [#allocation5], %s906_s5 }
  0x45   : > { %s181_s3 = sshll.u32 %s168_s9, 4  ;;  %p1735_p5 = scmp.lt.s32.totalorder %s1195_s17, 4  ;;  %s1385_s3 = int_to_ptr.vmem [resolvable:$true] %s181_s3 }
  0x46   : > { %s165_s30 = scalar_lea.sflag [#allocation6], %s164_s19  ;;  %s1055_s4 = scalar_lea.hbm %s1383_s0, 32 }
  0x47   : > { %p1391_p4 = pnand %p1735_p5, %p1364_p10  ;;  %p1056_p2 = scmp.ne.s32.totalorder %s1383_s0, %s1055_s4 }
  0x48   : > { %s1060_s6 = scalar_lea.hbm %s1714_s1, 4096  ;;  %p1061_p1 = scmp.lt.u32.totalorder %s1383_s0, %s1714_s1 }
  0x49   : > { %p1057_p11 = pneg %p1391_p4  ;;  %p1062_p6 = scmp.lt.u32.totalorder %s1060_s6, %s1055_s4 }
  0x4a   : > { %p1064_p10 = scmp.lt.u32.totalorder %s1055_s4, %s1383_s0 }
  0x4b   : > { %p1058_p8 = pnand %p1057_p11, %p1056_p2  ;;  %p1063_p13 = por %p1062_p6, %p1061_p1 }
  0x4d   : > { %p1059_p0 = pneg %p1058_p8  ;;  %p1065_p3 = por %p1064_p10, %p1063_p13 }
  0x4f   : > { %p1066_p7 = pnand %p1065_p3, %p1059_p0 }
  0x51   : > { %1069 = shalt.err (!%p1066_p7)
}
  0x52   : > { %s1070_s19 = scalar_lea.vmem %s1385_s3, 32  ;;  %s1198_s22 = smov [#allocation5]  }
  0x53   : > { %p1071_p5 = scmp.ne.s32.totalorder %s1385_s3, %s1070_s19  ;;  %s1075_s9 = sshll.u32 %s1198_s22, 4  ;;  %s1076_s9 = int_to_ptr.vmem [resolvable:$false] %s1075_s9 }
  0x54   : > { %s1077_s8 = scalar_lea.vmem %s1076_s9, 64  ;;  %p1078_p12 = scmp.lt.s32.totalorder %s1385_s3, %s1076_s9 }
  0x55   : > { %p1073_p2 = pnand %p1071_p5, %p1057_p11  ;;  %p1079_p1 = scmp.lt.s32.totalorder %s1077_s8, %s1070_s19 }
  0x57   : > { %p1074_p8 = pneg %p1073_p2  ;;  %p1080_p6 = por %p1079_p1, %p1078_p12 }
  0x59   : > { %p1081_p13 = pnand %p1080_p6, %p1074_p8 }
  0x5b   : > { %1084 = shalt.err (!%p1081_p13)
}
  0x5c   : > { %934 = dma.hbm_to_vmem [thread:$0]  (!%p1391_p4), %s1383_s0, 32, %s1385_s3, %s165_s30  }
  0x5d   : > { %190 = sbr.rel (%p1353_p9) target bundleno = 356 (0x164), region = 28  ;;  %s1423_s4 = sand.u32 (!%p1353_p9), 1, %s1179_s13  }
  0x5e   : > { %s911_s5 = sshll.u32 (!%p1353_p9), %s1423_s4, 6  ;;  %s193_s6 = scalar_lea.sflag (!%p1353_p9), [#allocation3], %s1423_s4 }
  0x5f   : > { %s1429_s24 = scalar_lea.vmem (!%p1353_p9), [#allocation2], %s911_s5  ;;  %p1737_p12 = scmp.ne.s32.totalorder (!%p1353_p9), %s1724_s25, 0 }
  0x64   : > { %1150 = dma.done.wait (%p1737_p12), %s193_s6, 1024  }
  0x65   : > { %1152 = vsyncadd (%p1737_p12), %s193_s6, 4294966272  ;;  %s201_s0 = sand.u32 1, %s1167_s10   ;;  %p1738_p9 = scmp.ne.s32.totalorder %s1734_s29, 0 }
  0x66   : > { %s912_s21 = sshll.u32 %s201_s0, 1  ;;  %s202_s3 = scalar_lea.sflag [#allocation6], %s201_s0 }
  0x67   : > { %s205_s23 = scalar_lea.vmem [#allocation5], %s912_s21 }
  0x68   : > { %1154 = dma.done.wait (%p1738_p9), %s202_s3, 32  }
  0x69   : > { %1156 = vsyncadd (%p1738_p9), %s202_s3, 4294967264  ;;  %v257_v0 = vlaneseq  ;;  %v1199_v1 = vmov 1983009808   ;;  %v1444_v7 = vld [vmem:[%s1429_s24] sm:$0xff]  ;;  %s1200_s25 = smov 2   ;;  %v1451_v10 = vld [vmem:[%s1429_s24 + $0x8] sm:$0xff] }
  0x6a   : > { %v255_v2 = vunpack.c.l.s4 %v1199_v1  ;;  %v914_v6 = vld.sshfl [vmem:[%s205_s23] sm:$0x3 pattern:$0x76325410]  ;;  %v253_v9 = vcombine.high %v1444_v7, %v1444_v7  ;;  %v1454_v11 = vld [vmem:[%s1429_s24 + $0x38] sm:$0xff]  ;;  %s1201_s29 = smov 1   ;;  %v270_v16 = vcombine.high %v1451_v10, %v1451_v10 }
  0x6b   : > { %v258_v3 = vshrl.u32 %v257_v0, 7  ;;  %757 = vrot.lane.b32.xlu0 %v914_v6, %s1200_s25  ;;  %v372_v15 = vcombine.high %v1454_v11, %v1454_v11  ;;  %v1472_v22 = vld [vmem:[%s1429_s24 + $0x10] sm:$0xff]  ;;  %v1484_v28 = vld [vmem:[%s1429_s24 + $0x18] sm:$0xff]  ;;  %v1496_v34 = vld [vmem:[%s1429_s24 + $0x20] sm:$0xff]  ;;  %p744_p4 = scmp.eq.s32.totalorder %s1187_s15, 0  ;;  %v1542_v59 = vand.u32 127, %v257_v0 }
  0x6c   : > { %v256_v4 = vunpack.c.0.s8 %v255_v2  ;;  %v287_v25 = vcombine.high %v1472_v22, %v1472_v22  ;;  %v304_v31 = vcombine.high %v1484_v28, %v1484_v28  ;;  %v321_v37 = vcombine.high %v1496_v34, %v1496_v34  ;;  %v1508_v40 = vld [vmem:[%s1429_s24 + $0x28] sm:$0xff]  ;;  %v1520_v46 = vld [vmem:[%s1429_s24 + $0x30] sm:$0xff]  ;;  %s1202_s18 = smov 127   ;;  %s1577_s19 = scalar_lea.vmem [#allocation7], %s911_s5 }
  0x6d   : > { %v338_v43 = vcombine.high %v1508_v40, %v1508_v40  ;;  %v355_v49 = vcombine.high %v1520_v46, %v1520_v46  ;;  %s746_s30 = scalar_select %p744_p4, 1, 0  ;;  %vm487_vm1 = vcmp.lt.s32.totalorder %v1542_v59, 1  ;;  %vm767_vm2 = vcmask 1024  }
  0x6e   : > { %v1441_v5 = vsub.s32 %v256_v4, %v258_v3  ;;  %s921_s22 = sshll.u32 %s1187_s15, 10  ;;  %s786_s9 = sshll.u32 %s1577_s19, 4  ;;  %s1657_s9 = int_to_ptr.vmem [resolvable:$true] %s786_s9 }
  0x6f   : > { %v747_v55 = vstv %s746_s30  ;;  %s1655_s6 = scalar_lea.hbm %s1715_s2, %s921_s22  ;;  %s770_s24 = scalar_lea.sflag [#allocation4], %s1423_s4 }
  0x70   : > { %v260_v8 = vrot.slane %v1444_v7, %v1441_v5  ;;  %v277_v13 = vrot.slane %v1451_v10, %v1441_v5  ;;  %v267_v14 = vrot.slane %v253_v9, %v1441_v5  ;;  %v386_v19 = vrot.slane %v372_v15, %v1441_v5  ;;  %s1085_s0 = scalar_lea.vmem %s1657_s9, 1024  ;;  %p1739_p0 = scmp.ne.s32.totalorder %s1725_s26, 0 }
  0x71   : > { %v284_v21 = vrot.slane %v270_v16, %v1441_v5  ;;  %v294_v24 = vrot.slane %v1472_v22, %v1441_v5  ;;  %v301_v27 = vrot.slane %v287_v25, %v1441_v5  ;;  %v311_v30 = vrot.slane %v1484_v28, %v1441_v5  ;;  %p1086_p11 = scmp.ne.s32.totalorder %s1657_s9, %s1085_s0  ;;  %s1203_s15 = smov [#allocation7]  }
  0x72   : > { %v268_v12 = vcombine.high %v260_v8, %v260_v8  ;;  %421 = vrot.lane.b32.xlu0 %v260_v8, %s1201_s29  ;;  %v285_v17 = vcombine.high %v277_v13, %v277_v13  ;;  %v269_v18 = vcombine.high %v267_v14, %v267_v14  ;;  %v388_v20 = vcombine.high %v386_v19, %v386_v19  ;;  %s1089_s21 = sshll.u32 %s1203_s15, 4  ;;  %s1090_s21 = int_to_ptr.vmem [resolvable:$false] %s1089_s21 }
  0x73   : > { %v286_v23 = vcombine.high %v284_v21, %v284_v21  ;;  %v302_v26 = vcombine.high %v294_v24, %v294_v24  ;;  %v303_v29 = vcombine.high %v301_v27, %v301_v27  ;;  %v319_v32 = vcombine.high %v311_v30, %v311_v30  ;;  %p1087_p10 = pnand %p1086_p11, %p1739_p0  ;;  %s1091_s3 = scalar_lea.vmem %s1090_s21, 2048 }
  0x74   : > { %423 = vrot.lane.b32.xlu1 %v268_v12, %s1201_s29  ;;  %v318_v33 = vrot.slane %v304_v31, %v1441_v5  ;;  %v328_v36 = vrot.slane %v1496_v34, %v1441_v5  ;;  %v335_v39 = vrot.slane %v321_v37, %v1441_v5  ;;  %v345_v42 = vrot.slane %v1508_v40, %v1441_v5  ;;  %p1092_p7 = scmp.lt.s32.totalorder %s1657_s9, %s1090_s21  ;;  %p1093_p5 = scmp.lt.s32.totalorder %s1091_s3, %s1085_s0 }
  0x75   : > { %v352_v45 = vrot.slane %v338_v43, %v1441_v5  ;;  %v362_v48 = vrot.slane %v1520_v46, %v1441_v5  ;;  %v369_v51 = vrot.slane %v355_v49, %v1441_v5  ;;  %v379_v53 = vrot.slane %v1454_v11, %v1441_v5  ;;  %p1088_p3 = pneg %p1087_p10 }
  0x76   : > { %429 = vrot.lane.b32.xlu0 %v277_v13, %s1201_s29  ;;  %v320_v35 = vcombine.high %v318_v33, %v318_v33  ;;  %v336_v38 = vcombine.high %v328_v36, %v328_v36  ;;  %v337_v41 = vcombine.high %v335_v39, %v335_v39  ;;  %v353_v44 = vcombine.high %v345_v42, %v345_v42  ;;  %p1094_p2 = por %p1093_p5, %p1092_p7 }
  0x77   : > { %v354_v47 = vcombine.high %v352_v45, %v352_v45  ;;  %v370_v50 = vcombine.high %v362_v48, %v362_v48  ;;  %v371_v52 = vcombine.high %v369_v51, %v369_v51  ;;  %v387_v54 = vcombine.high %v379_v53, %v379_v53 }
  0x78   : > { %425 = vrot.lane.b32.xlu1 %v267_v14, %s1201_s29  ;;  %vm748_vm0 = vcmp.eq.s32.totalorder %v747_v55, 1  ;;  %p1095_p8 = pnand %p1094_p2, %p1088_p3 }
  0x7a   : > { %427 = vrot.lane.b32.xlu0 %v269_v18, %s1201_s29 }
  0x7c   : > { %431 = vrot.lane.b32.xlu1 %v285_v17, %s1201_s29 }
  0x7e   : > { %433 = vrot.lane.b32.xlu0 %v284_v21, %s1201_s29 }
  0x80   : > { %483 = vrot.lane.b32.xlu1 %v388_v20, %s1201_s29 }
  0x82   : > { %437 = vrot.lane.b32.xlu0 %v294_v24, %s1201_s29 }
  0x84   : > { %435 = vrot.lane.b32.xlu1 %v286_v23, %s1201_s29 }
  0x86   : > { %441 = vrot.lane.b32.xlu0 %v301_v27, %s1201_s29 }
  0x88   : > { %439 = vrot.lane.b32.xlu1 %v302_v26, %s1201_s29 }
  0x8a   : > { %445 = vrot.lane.b32.xlu0 %v311_v30, %s1201_s29 }
  0x8c   : > { %443 = vrot.lane.b32.xlu1 %v303_v29, %s1201_s29 }
  0x8e   : > { %449 = vrot.lane.b32.xlu0 %v318_v33, %s1201_s29 }
  0x90   : > { %447 = vrot.lane.b32.xlu1 %v319_v32, %s1201_s29 }
  0x92   : > { %453 = vrot.lane.b32.xlu0 %v328_v36, %s1201_s29 }
  0x94   : > { %451 = vrot.lane.b32.xlu1 %v320_v35, %s1201_s29 }
  0x96   : > { %457 = vrot.lane.b32.xlu0 %v335_v39, %s1201_s29 }
  0x98   : > { %455 = vrot.lane.b32.xlu1 %v336_v38, %s1201_s29 }
  0x9a   : > { %461 = vrot.lane.b32.xlu0 %v345_v42, %s1201_s29 }
  0x9c   : > { %459 = vrot.lane.b32.xlu1 %v337_v41, %s1201_s29 }
  0x9e   : > { %465 = vrot.lane.b32.xlu0 %v352_v45, %s1201_s29 }
  0xa0   : > { %463 = vrot.lane.b32.xlu1 %v353_v44, %s1201_s29 }
  0xa2   : > { %469 = vrot.lane.b32.xlu0 %v362_v48, %s1201_s29 }
  0xa4   : > { %467 = vrot.lane.b32.xlu1 %v354_v47, %s1201_s29 }
  0xa6   : > { %473 = vrot.lane.b32.xlu0 %v369_v51, %s1201_s29 }
  0xa8   : > { %471 = vrot.lane.b32.xlu1 %v370_v50, %s1201_s29 }
  0xaa   : > { %477 = vrot.lane.b32.xlu0 %v379_v53, %s1201_s29 }
  0xac   : > { %475 = vrot.lane.b32.xlu1 %v371_v52, %s1201_s29 }
  0xae   : > { %481 = vrot.lane.b32.xlu0 %v386_v19, %s1201_s29 }
  0xb0   : > { %479 = vrot.lane.b32.xlu1 %v387_v54, %s1201_s29 }
  0xdd   : > { %v758_v56 = vpop.permute.xlu0 %757 }
  0xde   : > { %v760_v57 = vsel %vm748_vm0, %v1444_v7, %v758_v56 }
  0xdf   : > { %v761_v58 = vmul.f32 0.97, %v760_v57 }
  0xe1   : > { %763 = vrot.lane.b32.xlu1 %v761_v58, %s1202_s18 }
  0xe4   : > { %v422_v60 = vpop.permute.xlu0 %421 }
  0xe6   : > { %v424_v61 = vpop.permute.xlu1 %423 }
  0xe7   : > { %v518_v6 = vsel %vm487_vm1, %v422_v60, %v424_v61 }
  0xe8   : > { %v430_v62 = vpop.permute.xlu0 %429  ;;  %v521_v13 = vmul.f32 0.97, %v518_v6 }
  0xea   : > { %v426_v63 = vpop.permute.xlu1 %425 }
  0xeb   : > { %v517_v1 = vsel %vm487_vm1, %v424_v61, %v426_v63 }
  0xec   : > { %v522_v2 = vmul.f32 0.97, %v517_v1  ;;  %v428_v4 = vpop.permute.xlu0 %427 }
  0xed   : > { %v515_v8 = vsel %vm487_vm1, %v428_v4, %v430_v62  ;;  %v516_v9 = vsel %vm487_vm1, %v426_v63, %v428_v4 }
  0xee   : > { %v432_v3 = vpop.permute.xlu1 %431  ;;  %v523_v12 = vmul.f32 0.97, %v516_v9  ;;  %v524_v15 = vmul.f32 0.97, %v515_v8 }
  0xef   : > { %v514_v0 = vsel %vm487_vm1, %v430_v62, %v432_v3 }
  0xf0   : > { %v525_v14 = vmul.f32 0.97, %v514_v0  ;;  %v585_v16 = vcombine.low %v522_v2, %v523_v12  ;;  %v434_v18 = vpop.permute.xlu0 %433 }
  0xf1   : > { %v513_v20 = vsel %vm487_vm1, %v432_v3, %v434_v18 }
  0xf2   : > { %v1555_v17 = vpop.permute.xlu1 %483  ;;  %v599_v23 = vrot.slane %v585_v16, %v1441_v5  ;;  %v601_v24 = vcombine.low %v524_v15, %v525_v14  ;;  %v526_v26 = vmul.f32 0.97, %v513_v20 }
  0xf3   : > { %v519_v19 = vsel %vm487_vm1, %v1555_v17, %v422_v60 }
  0xf4   : > { %v520_v21 = vmul.f32 0.97, %v519_v19  ;;  %v438_v29 = vpop.permute.xlu0 %437  ;;  %v609_v35 = vrot.slane %v601_v24, %v1441_v5 }
  0xf6   : > { %v584_v25 = vcombine.low %v520_v21, %v521_v13  ;;  %v436_v27 = vpop.permute.xlu1 %435 }
  0xf7   : > { %v512_v30 = vsel %vm487_vm1, %v434_v18, %v436_v27  ;;  %v511_v31 = vsel %vm487_vm1, %v436_v27, %v438_v29 }
  0xf8   : > { %v592_v32 = vrot.slane %v584_v25, %v1441_v5  ;;  %v527_v33 = vmul.f32 0.97, %v512_v30  ;;  %v528_v38 = vmul.f32 0.97, %v511_v31  ;;  %v442_v41 = vpop.permute.xlu0 %441 }
  0xfa   : > { %v600_v36 = vcombine.low %v592_v32, %v599_v23  ;;  %v602_v37 = vcombine.low %v526_v26, %v527_v33  ;;  %v440_v39 = vpop.permute.xlu1 %439 }
  0xfb   : > { %v510_v42 = vsel %vm487_vm1, %v438_v29, %v440_v39  ;;  %v509_v43 = vsel %vm487_vm1, %v440_v39, %v442_v41 }
  0xfc   : > { %v728_v44 = vsub.f32 %v1444_v7, %v600_v36  ;;  %v616_v45 = vrot.slane %v602_v37, %v1441_v5  ;;  %v529_v47 = vmul.f32 0.97, %v510_v42  ;;  %v530_v50 = vmul.f32 0.97, %v509_v43  ;;  %v446_v52 = vpop.permute.xlu0 %445 }
  0xfe   : > { %736 = vst [vmem:[%s1577_s19] sm:$0xff] %v728_v44  ;;  %v617_v48 = vcombine.low %v609_v35, %v616_v45  ;;  %v618_v49 = vcombine.low %v528_v38, %v529_v47  ;;  %v444_v51 = vpop.permute.xlu1 %443 }
  0xff   : > { %v508_v53 = vsel %vm487_vm1, %v442_v41, %v444_v51  ;;  %v507_v54 = vsel %vm487_vm1, %v444_v51, %v446_v52 }
 0x100   : > { %v729_v55 = vsub.f32 %v1451_v10, %v617_v48  ;;  %v531_v56 = vmul.f32 0.97, %v508_v53  ;;  %v626_v57 = vrot.slane %v618_v49, %v1441_v5  ;;  %v532_v60 = vmul.f32 0.97, %v507_v54  ;;  %v450_v62 = vpop.permute.xlu0 %449 }
 0x102   : > { %737 = vst [vmem:[%s1577_s19 + $0x8] sm:$0xff] %v729_v55  ;;  %v619_v58 = vcombine.low %v530_v50, %v531_v56  ;;  %v448_v61 = vpop.permute.xlu1 %447 }
 0x103   : > { %v506_v63 = vsel %vm487_vm1, %v446_v52, %v448_v61  ;;  %v505_v1 = vsel %vm487_vm1, %v448_v61, %v450_v62 }
 0x104   : > { %v633_v2 = vrot.slane %v619_v58, %v1441_v5  ;;  %v533_v3 = vmul.f32 0.97, %v506_v63  ;;  %v534_v6 = vmul.f32 0.97, %v505_v1  ;;  %v454_v8 = vpop.permute.xlu0 %453 }
 0x106   : > { %v634_v4 = vcombine.low %v626_v57, %v633_v2  ;;  %v635_v10 = vcombine.low %v532_v60, %v533_v3  ;;  %v452_v0 = vpop.permute.xlu1 %451 }
 0x107   : > { %v504_v9 = vsel %vm487_vm1, %v450_v62, %v452_v0  ;;  %v503_v12 = vsel %vm487_vm1, %v452_v0, %v454_v8 }
 0x108   : > { %v730_v13 = vsub.f32 %v1472_v22, %v634_v4  ;;  %v535_v14 = vmul.f32 0.97, %v504_v9  ;;  %v643_v15 = vrot.slane %v635_v10, %v1441_v5  ;;  %v536_v18 = vmul.f32 0.97, %v503_v12  ;;  %v458_v20 = vpop.permute.xlu0 %457 }
 0x10a   : > { %738 = vst [vmem:[%s1577_s19 + $0x10] sm:$0xff] %v730_v13  ;;  %v636_v16 = vcombine.low %v534_v6, %v535_v14  ;;  %v456_v19 = vpop.permute.xlu1 %455 }
 0x10b   : > { %v502_v21 = vsel %vm487_vm1, %v454_v8, %v456_v19  ;;  %v501_v23 = vsel %vm487_vm1, %v456_v19, %v458_v20 }
 0x10c   : > { %v650_v24 = vrot.slane %v636_v16, %v1441_v5  ;;  %v537_v25 = vmul.f32 0.97, %v502_v21  ;;  %v538_v27 = vmul.f32 0.97, %v501_v23  ;;  %v462_v30 = vpop.permute.xlu0 %461 }
 0x10e   : > { %v651_v26 = vcombine.low %v643_v15, %v650_v24  ;;  %v652_v22 = vcombine.low %v536_v18, %v537_v25  ;;  %v460_v29 = vpop.permute.xlu1 %459 }
 0x10f   : > { %v500_v31 = vsel %vm487_vm1, %v458_v20, %v460_v29  ;;  %v499_v32 = vsel %vm487_vm1, %v460_v29, %v462_v30 }
 0x110   : > { %v731_v33 = vsub.f32 %v1484_v28, %v651_v26  ;;  %v539_v35 = vmul.f32 0.97, %v500_v31  ;;  %v660_v36 = vrot.slane %v652_v22, %v1441_v5  ;;  %v540_v38 = vmul.f32 0.97, %v499_v32  ;;  %v466_v41 = vpop.permute.xlu0 %465 }
 0x112   : > { %739 = vst [vmem:[%s1577_s19 + $0x18] sm:$0xff] %v731_v33  ;;  %v653_v37 = vcombine.low %v538_v27, %v539_v35  ;;  %v464_v39 = vpop.permute.xlu1 %463 }
 0x113   : > { %v498_v42 = vsel %vm487_vm1, %v462_v30, %v464_v39  ;;  %v497_v43 = vsel %vm487_vm1, %v464_v39, %v466_v41 }
 0x114   : > { %v667_v44 = vrot.slane %v653_v37, %v1441_v5  ;;  %v541_v45 = vmul.f32 0.97, %v498_v42  ;;  %v542_v48 = vmul.f32 0.97, %v497_v43  ;;  %v470_v50 = vpop.permute.xlu0 %469 }
 0x116   : > { %v668_v47 = vcombine.low %v660_v36, %v667_v44  ;;  %v669_v28 = vcombine.low %v540_v38, %v541_v45  ;;  %v468_v49 = vpop.permute.xlu1 %467 }
 0x117   : > { %v496_v51 = vsel %vm487_vm1, %v466_v41, %v468_v49  ;;  %v495_v52 = vsel %vm487_vm1, %v468_v49, %v470_v50 }
 0x118   : > { %v732_v53 = vsub.f32 %v1496_v34, %v668_v47  ;;  %v543_v54 = vmul.f32 0.97, %v496_v51  ;;  %v677_v55 = vrot.slane %v669_v28, %v1441_v5  ;;  %v544_v57 = vmul.f32 0.97, %v495_v52  ;;  %v474_v60 = vpop.permute.xlu0 %473 }
 0x11a   : > { %740 = vst [vmem:[%s1577_s19 + $0x20] sm:$0xff] %v732_v53  ;;  %v670_v56 = vcombine.low %v542_v48, %v543_v54  ;;  %v472_v58 = vpop.permute.xlu1 %471 }
 0x11b   : > { %v494_v61 = vsel %vm487_vm1, %v470_v50, %v472_v58  ;;  %v493_v62 = vsel %vm487_vm1, %v472_v58, %v474_v60 }
 0x11c   : > { %v684_v63 = vrot.slane %v670_v56, %v1441_v5  ;;  %v545_v1 = vmul.f32 0.97, %v494_v61  ;;  %v546_v3 = vmul.f32 0.97, %v493_v62  ;;  %v478_v10 = vpop.permute.xlu0 %477 }
 0x11e   : > { %v685_v2 = vcombine.low %v677_v55, %v684_v63  ;;  %v686_v34 = vcombine.low %v544_v57, %v545_v1  ;;  %v476_v4 = vpop.permute.xlu1 %475 }
 0x11f   : > { %v492_v6 = vsel %vm487_vm1, %v474_v60, %v476_v4  ;;  %v491_v0 = vsel %vm487_vm1, %v476_v4, %v478_v10 }
 0x120   : > { %v733_v8 = vsub.f32 %v1508_v40, %v685_v2  ;;  %v547_v9 = vmul.f32 0.97, %v492_v6  ;;  %v694_v12 = vrot.slane %v686_v34, %v1441_v5  ;;  %v548_v14 = vmul.f32 0.97, %v491_v0  ;;  %v482_v16 = vpop.permute.xlu0 %481 }
 0x121   : > { %v488_v19 = vsel %vm487_vm1, %v482_v16, %v1555_v17 }
 0x122   : > { %741 = vst [vmem:[%s1577_s19 + $0x28] sm:$0xff] %v733_v8  ;;  %v687_v13 = vcombine.low %v546_v3, %v547_v9  ;;  %v480_v15 = vpop.permute.xlu1 %479  ;;  %v551_v24 = vmul.f32 0.97, %v488_v19 }
 0x123   : > { %v490_v18 = vsel %vm487_vm1, %v478_v10, %v480_v15  ;;  %v489_v40 = vsel %vm487_vm1, %v480_v15, %v482_v16 }
 0x124   : > { %v701_v20 = vrot.slane %v687_v13, %v1441_v5  ;;  %v549_v21 = vmul.f32 0.97, %v490_v18  ;;  %v550_v23 = vmul.f32 0.97, %v489_v40 }
 0x126   : > { %v702_v25 = vcombine.low %v694_v12, %v701_v20  ;;  %v703_v26 = vcombine.low %v548_v14, %v549_v21  ;;  %v704_v22 = vcombine.low %v550_v23, %v551_v24 }
 0x128   : > { %v734_v27 = vsub.f32 %v1520_v46, %v702_v25  ;;  %v711_v29 = vrot.slane %v703_v26, %v1441_v5  ;;  %v718_v17 = vrot.slane %v704_v22, %v1441_v5 }
 0x12a   : > { %742 = vst [vmem:[%s1577_s19 + $0x30] sm:$0xff] %v734_v27  ;;  %v719_v59 = vcombine.low %v711_v29, %v718_v17 }
 0x12c   : > { %v735_v30 = vsub.f32 %v1454_v11, %v719_v59 }
 0x12e   : > { %743 = vst [vmem:[%s1577_s19 + $0x38] sm:$0xff] %v735_v30 }
 0x153   : > { %v764_v31 = vpop.permute.xlu1 %763 }
 0x154   : > { %v766_v32 = vsub.f32 %v1444_v7, %v764_v31 }
 0x156   : > { %768 = vst.msk [vmem:[%s1577_s19] sm:$0x3] %vm767_vm2, %v766_v32 }
 0x157   : > { %1098 = shalt.err (!%p1095_p8)
}
 0x158   : > { %s1099_s4 = scalar_lea.hbm %s1655_s6, 1024  ;;  %s1103_s29 = scalar_lea.hbm %s1715_s2, 4096 }
 0x159   : > { %p1100_p1 = scmp.ne.s32.totalorder %s1655_s6, %s1099_s4  ;;  %p1104_p12 = scmp.lt.u32.totalorder %s1655_s6, %s1715_s2 }
 0x15a   : > { %p1105_p9 = scmp.lt.u32.totalorder %s1103_s29, %s1099_s4  ;;  %p1107_p11 = scmp.lt.u32.totalorder %s1099_s4, %s1655_s6 }
 0x15b   : > { %p1101_p6 = pnand %p1100_p1, %p1739_p0 }
 0x15c   : > { %p1106_p4 = por %p1105_p9, %p1104_p12 }
 0x15d   : > { %p1102_p13 = pneg %p1101_p6 }
 0x15e   : > { %p1108_p10 = por %p1107_p11, %p1106_p4 }
 0x160   : > { %p1109_p3 = pnand %p1108_p10, %p1102_p13 }
 0x162   : > { %1112 = shalt.err (!%p1109_p3)
}
 0x163   : > { %926 = dma.vmem_to_hbm [thread:$0]  (%p1739_p0), %s1657_s9, 1024, %s1655_s6, %s770_s24  }
 0x164 PF: > { %p940_p7 = scmp.ge.s32.totalorder %s1195_s17, 2  ;;  %s798_s19 = sand.u32 1, %s1175_s12  }
 0x165   : > { %p1740_p5 = scmp.ne.s32.totalorder %s1726_s28, 0  ;;  %s799_s22 = scalar_lea.sflag [#allocation4], %s798_s19 }
 0x167   : > { %p936_p2 = pnand %p940_p7, %p1740_p5 }
 0x169   : > { %1158 = dma.done.wait (!%p936_p2), %s799_s22, 1024  }
 0x16a   : > { %1160 = vsyncadd (!%p936_p2), %s799_s22, 4294966272  ;;  %s21_s17 = sadd.s32 1, %s1195_s17   ;;  %s1741_s9 = smov %s1167_s10 }
 0x16b   : > { %p18_p8 = scmp.ge.s32.totalorder %s21_s17, 6   ;;  %s1742_s10 = smov %s1171_s11 }
 0x16c   : > { %s1743_s11 = smov %s1378_s7  ;;  %s1744_s12 = smov %s1179_s13 }
 0x16d   : > { %s1745_s13 = smov %s1183_s14  ;;  %s1746_s14 = smov %s1298_s27 }
 0x16e   : > { %s1747_s15 = smov %s1191_s16  ;;  %s1748_s16 = smov %s1750_s20 }
 0x16f   :  { %20 = sbr.rel (!%p18_p8) target bundleno = 12 (0xc), region = 86 }
 0x176   :  { %804 = vsyncpa [#allocation3], 1 }
 0x177   :  { %806 = vsyncpa [#allocation3 + $0x1], 1 }
 0x178   :  { %807 = vsyncpa [#allocation6], 1 }
 0x179   :  { %809 = vsyncpa [#allocation6 + $0x1], 1 }
 0x17a   :  { %810 = vsyncpa [#allocation4], 1 }
 0x17b   :  { %812 = vsyncpa [#allocation4 + $0x1], 1 }

</bundles_post_ra>
